<compile_context>
chip_gen: v7x
topology: tpu7x:2x2x1
jax: 0.10.0
libtpu: 0.0.40
codegen_flags: <defaults>
</compile_context>

<pallas_src>
import functools

import jax
import jax.numpy as jnp
from jax.experimental import pallas as pl
from jax.experimental.pallas import tpu as pltpu

_BF16 = jnp.bfloat16
_VMEM_BUDGET = 48 * 1024 * 1024          # headroom under v7x's 64 MiB VMEM


# ----------------------------- kernels --------------------------------------

def _mlp_kernel(x_ref, s_ref, w1_ref, b1_ref, w2_ref, b2_ref,
                woh_ref, wos_ref, bo_ref, o_ref, *, n_sent):
    # Layer 1: Linear (+ folded BN) + ReLU.  x / W already bf16, accumulate f32.
    h1 = jnp.dot(x_ref[...], w1_ref[...], preferred_element_type=jnp.float32)
    h1 = jnp.maximum(h1 + b1_ref[...], 0.0)
    # Layer 2: Linear (+ folded BN) + ReLU.
    h2 = jnp.dot(h1.astype(_BF16), w2_ref[...], preferred_element_type=jnp.float32)
    h2 = jnp.maximum(h2 + b2_ref[...], 0.0)
    # Output: concat([h2, s]) @ WO.T == h2 @ WO_h.T + s @ WO_s.T.  The hidden
    # part stays on the MXU; the tiny sentiment part (n_sent cols, usually 1)
    # is an unrolled f32 VPU broadcast-FMA -- no zero-padded MXU pass.
    out = jnp.dot(h2.astype(_BF16), woh_ref[...], preferred_element_type=jnp.float32)
    out = out + bo_ref[...]
    s = s_ref[...]
    wos = wos_ref[...]
    for k in range(n_sent):                       # static, tiny -> unrolled
        out = out + s[:, k:k + 1] * wos[k:k + 1, :]
    o_ref[...] = out.astype(o_ref.dtype)


def _mlp_kernel_no_sent(x_ref, w1_ref, b1_ref, w2_ref, b2_ref,
                        wo_ref, bo_ref, o_ref):
    h1 = jnp.dot(x_ref[...], w1_ref[...], preferred_element_type=jnp.float32)
    h1 = jnp.maximum(h1 + b1_ref[...], 0.0)
    h2 = jnp.dot(h1.astype(_BF16), w2_ref[...], preferred_element_type=jnp.float32)
    h2 = jnp.maximum(h2 + b2_ref[...], 0.0)
    out = jnp.dot(h2.astype(_BF16), wo_ref[...], preferred_element_type=jnp.float32)
    o_ref[...] = (out + bo_ref[...]).astype(o_ref.dtype)


# ----------------------------- host-side helpers ----------------------------

def _round_up(n, m):
    return ((n + m - 1) // m) * m


def _fold_bn(w, b, gamma, beta, mean, var, eps):
    """Fold eval-mode BatchNorm1d into the preceding Linear.
    w: PyTorch layout [out, in]. Returns (fused W.T [in, out], shift [out])."""
    scale = gamma / jnp.sqrt(var + eps)
    w_t = w.T * scale[None, :]
    shift = (b - mean) * scale + beta
    return w_t, shift


def prepare_mlp_params(params, *, eps=1e-5):
    """One-time weight prep, hoisted out of the forward path: BN fold,
    transpose to [in, out], WO column split (hidden | sentiment), bf16 cast of
    the MXU weights.  Cache the result and reuse across forward calls."""
    d2 = params["w2"].shape[0]
    w1_t, sh1 = _fold_bn(params["w1"], params["b1"], params["g1"], params["beta1"],
                         params["mean1"], params["var1"], eps)
    w2_t, sh2 = _fold_bn(params["w2"], params["b2"], params["g2"], params["beta2"],
                         params["mean2"], params["var2"], eps)
    wo = params["wo"]                                     # [d_out, d2 + n_sent]
    n_sent = wo.shape[1] - d2
    return dict(
        w1=w1_t.astype(_BF16),
        b1=sh1.reshape(1, -1).astype(jnp.float32),
        w2=w2_t.astype(_BF16),
        b2=sh2.reshape(1, -1).astype(jnp.float32),
        woh=wo[:, :d2].T.astype(_BF16),                   # [d2, d_out]
        wos=(wo[:, d2:].T.astype(jnp.float32) if n_sent > 0 else None),
        bo=params["bo"].reshape(1, -1).astype(jnp.float32),
    )


def _pick_batch_tile(batch):
    """Large tiles amortize the ~0.35 us per-grid-step overhead; cap so the
    "parallel" batch axis always has >= 2 steps (both v7x TensorCores run)."""
    if batch <= 8:
        return batch                       # single block == full array dim
    return min(1024, _round_up(pl.cdiv(batch, 2), 8))


def _shrink_for_vmem(tb, d_in, d1, d2, d_out, n_sent):
    """Keep resident weights + double-buffered activation tiles under a budget
    sized for v7x's 64 MiB VMEM (half of v5e/v6e)."""
    weight_bytes = 2 * (d_in * d1 + d1 * d2 + d2 * d_out)        # bf16 matrices
    weight_bytes += 4 * (d1 + d2 + d_out + n_sent * d_out)       # f32 shifts/wos
    weight_bytes *= 2                       # conservative if Buffered(1) unavailable

    def act_bytes(t):
        stream = t * (d_in * 2 + n_sent * 4 + d_out * 4)         # bf16 x, f32 s/out
        return 2 * stream + t * (d1 + d2) * 4                    # dbl-buffered + h1/h2

    while tb > 8 and weight_bytes + act_bytes(tb) > _VMEM_BUDGET:
        tb = max(8, _round_up(tb // 2, 8))
    if weight_bytes + act_bytes(tb) > _VMEM_BUDGET:
        # TODO(synk): for very wide hidden layers, tile the weights over an
        # extra "arbitrary" grid axis instead of keeping them VMEM-resident.
        raise NotImplementedError("MLP weights exceed the VMEM budget")
    return tb


def _res_spec(shape):
    """Constant index_map -> block is DMA'd once and stays VMEM-resident across
    all batch tiles; Buffered(1) (where supported) drops the useless 2nd buffer."""
    index_map = lambda i: (0,) * len(shape)
    if hasattr(pl, "Buffered"):
        try:
            return pl.BlockSpec(shape, index_map, pipeline_mode=pl.Buffered(1))
        except (TypeError, ValueError):     # older jax without pipeline_mode
            pass
    return pl.BlockSpec(shape, index_map)


# ----------------------------- wrapper ---------------------------------------

def mlp_forward(x, single_sentiment_values, prepared):
    """x: [B, d_in]; single_sentiment_values: [B, n_sent] or None;
    prepared: output of prepare_mlp_params (call once, reuse)."""
    batch, d_in = x.shape
    d1 = prepared["w1"].shape[1]
    d2 = prepared["w2"].shape[1]
    d_out = prepared["bo"].shape[1]
    has_sent = single_sentiment_values is not None
    n_sent = single_sentiment_values.shape[1] if has_sent else 0

    # Halve the dominant HBM->VMEM stream; f32 accumulation happens in-kernel.
    x_bf16 = x.astype(_BF16)

    tb = _shrink_for_vmem(_pick_batch_tile(batch), d_in, d1, d2, d_out, n_sent)
    grid = (pl.cdiv(batch, tb),)            # partial last block; no batch padding

    row_spec = lambda cols: pl.BlockSpec((tb, cols), lambda i: (i, 0))
    out_shape = jax.ShapeDtypeStruct((batch, d_out), jnp.float32)
    compiler_params = pltpu.CompilerParams(
        dimension_semantics=("parallel",),
        vmem_limit_bytes=_VMEM_BUDGET,
    )

    if has_sent:
        out = pl.pallas_call(
            functools.partial(_mlp_kernel, n_sent=n_sent),
            out_shape=out_shape,
            grid=grid,
            in_specs=[
                row_spec(d_in),              # x tile (bf16, batch-tiled)
                row_spec(n_sent),            # sentiments tile (unpadded, f32)
                _res_spec((d_in, d1)),       # W1 (bf16, VMEM-resident)
                _res_spec((1, d1)),          # fused bias/BN shift 1
                _res_spec((d1, d2)),         # W2
                _res_spec((1, d2)),          # fused bias/BN shift 2
                _res_spec((d2, d_out)),      # WO hidden columns
                _res_spec((n_sent, d_out)),  # WO sentiment columns (f32, VPU)
                _res_spec((1, d_out)),       # bo
            ],
            out_specs=row_spec(d_out),       # narrow, unpadded output
            compiler_params=compiler_params,
        )(x_bf16, single_sentiment_values.astype(jnp.float32),
          prepared["w1"], prepared["b1"], prepared["w2"], prepared["b2"],
          prepared["woh"], prepared["wos"], prepared["bo"])
    else:
        out = pl.pallas_call(
            _mlp_kernel_no_sent,
            out_shape=out_shape,
            grid=grid,
            in_specs=[
                row_spec(d_in),
                _res_spec((d_in, d1)), _res_spec((1, d1)),
                _res_spec((d1, d2)), _res_spec((1, d2)),
                _res_spec((d2, d_out)), _res_spec((1, d_out)),
            ],
            out_specs=row_spec(d_out),
            compiler_params=compiler_params,
        )(x_bf16, prepared["w1"], prepared["b1"], prepared["w2"],
          prepared["b2"], prepared["woh"], prepared["bo"])
    return out


# ----------------------------- reference & demo ------------------------------

def mlp_reference(x, s, p, eps=1e-5):
    h = x @ p["w1"].T + p["b1"]
    h = (h - p["mean1"]) / jnp.sqrt(p["var1"] + eps) * p["g1"] + p["beta1"]
    h = jnp.maximum(h, 0.0)
    h = h @ p["w2"].T + p["b2"]
    h = (h - p["mean2"]) / jnp.sqrt(p["var2"] + eps) * p["g2"] + p["beta2"]
    h = jnp.maximum(h, 0.0)
    z = jnp.concatenate([h, s], axis=1) if s is not None else h
    return z @ p["wo"].T + p["bo"]


if __name__ == "__main__":
    key = jax.random.PRNGKey(0)
    ks = jax.random.split(key, 16)

    batch = 16
    initial_in = 64
    final_out = 4
    uses_single_sentiments = 1
    d1, d2 = initial_in // 2, initial_in // 4

    def kaiming_uniform(k, fan_out, fan_in):
        bound = jnp.sqrt(6.0 / fan_in)   # gain=sqrt(2) -> bound = gain*sqrt(3/fan_in)
        return jax.random.uniform(k, (fan_out, fan_in), jnp.float32, -bound, bound)

    params = dict(
        w1=kaiming_uniform(ks[0], d1, initial_in),
        b1=0.1 * jax.random.normal(ks[1], (d1,), jnp.float32),
        g1=1.0 + 0.1 * jax.random.normal(ks[2], (d1,), jnp.float32),
        beta1=0.1 * jax.random.normal(ks[3], (d1,), jnp.float32),
        mean1=0.1 * jax.random.normal(ks[4], (d1,), jnp.float32),
        var1=jax.random.uniform(ks[5], (d1,), jnp.float32, 0.5, 1.5),
        w2=kaiming_uniform(ks[6], d2, d1),
        b2=0.1 * jax.random.normal(ks[7], (d2,), jnp.float32),
        g2=1.0 + 0.1 * jax.random.normal(ks[8], (d2,), jnp.float32),
        beta2=0.1 * jax.random.normal(ks[9], (d2,), jnp.float32),
        mean2=0.1 * jax.random.normal(ks[10], (d2,), jnp.float32),
        var2=jax.random.uniform(ks[11], (d2,), jnp.float32, 0.5, 1.5),
        wo=kaiming_uniform(ks[12], final_out, d2 + uses_single_sentiments),
        bo=0.1 * jax.random.normal(ks[13], (final_out,), jnp.float32),
    )

    x = jax.random.normal(ks[14], (batch, initial_in), jnp.float32)
    s = jax.random.normal(ks[15], (batch, uses_single_sentiments), jnp.float32)

    forward = jax.jit(mlp_forward)

    # Branch 1: with single_sentiment_values.
    prepared = prepare_mlp_params(params)        # one-time prep, reused per call
    out = jax.block_until_ready(forward(x, s, prepared))
    ref = mlp_reference(x, s, params)
    assert out.shape == (batch, final_out)
    assert jnp.allclose(out, ref, atol=5e-2, rtol=5e-2), float(jnp.max(jnp.abs(out - ref)))

    # Branch 2: single_sentiment_values is None (O consumes only the MLP trunk).
    params_nos = dict(params)
    params_nos["wo"] = params["wo"][:, :d2]
    prepared_nos = prepare_mlp_params(params_nos)
    out_nos = jax.block_until_ready(forward(x, None, prepared_nos))
    ref_nos = mlp_reference(x, None, params_nos)
    assert out_nos.shape == (batch, final_out)
    assert jnp.allclose(out_nos, ref_nos, atol=5e-2, rtol=5e-2), \
        float(jnp.max(jnp.abs(out_nos - ref_nos)))

    print("KERNEL_OK")
</pallas_src>

<mosaic_0001>
module attributes {stable_mosaic.version = 11 : i64} {
  func.func @_mlp_kernel(%arg0: i32, %arg1: memref<8x64xbf16, #tpu.memory_space<vmem>>, %arg2: memref<8x1xf32, #tpu.memory_space<vmem>>, %arg3: memref<64x32xbf16, #tpu.memory_space<vmem>>, %arg4: memref<1x32xf32, #tpu.memory_space<vmem>>, %arg5: memref<32x16xbf16, #tpu.memory_space<vmem>>, %arg6: memref<1x16xf32, #tpu.memory_space<vmem>>, %arg7: memref<16x4xbf16, #tpu.memory_space<vmem>>, %arg8: memref<1x4xf32, #tpu.memory_space<vmem>>, %arg9: memref<1x4xf32, #tpu.memory_space<vmem>>, %arg10: memref<8x4xf32, #tpu.memory_space<vmem>>) attributes {dimension_semantics = [#tpu.dimension_semantics<parallel>], iteration_bounds = array<i64: 2>, scalar_prefetch = 0 : i64, scratch_operands = 0 : i64, tpu.core_type = #tpu.core_type<tc>, window_params = [{transform_indices = @transform_0, window_bounds = array<i64: 8, 64>}, {transform_indices = @transform_1, window_bounds = array<i64: 8, 1>}, {pipeline_mode = #tpu.pipeline_mode<synchronous>, transform_indices = @transform_2, window_bounds = array<i64: 64, 32>}, {pipeline_mode = #tpu.pipeline_mode<synchronous>, transform_indices = @transform_3, window_bounds = array<i64: 1, 32>}, {pipeline_mode = #tpu.pipeline_mode<synchronous>, transform_indices = @transform_4, window_bounds = array<i64: 32, 16>}, {pipeline_mode = #tpu.pipeline_mode<synchronous>, transform_indices = @transform_5, window_bounds = array<i64: 1, 16>}, {pipeline_mode = #tpu.pipeline_mode<synchronous>, transform_indices = @transform_6, window_bounds = array<i64: 16, 4>}, {pipeline_mode = #tpu.pipeline_mode<synchronous>, transform_indices = @transform_7, window_bounds = array<i64: 1, 4>}, {pipeline_mode = #tpu.pipeline_mode<synchronous>, transform_indices = @transform_8, window_bounds = array<i64: 1, 4>}, {transform_indices = @transform_9, window_bounds = array<i64: 8, 4>}]} {
    %c0 = arith.constant 0 : index
    %c0_0 = arith.constant 0 : index
    %0 = vector.load %arg1[%c0, %c0_0] : memref<8x64xbf16, #tpu.memory_space<vmem>>, vector<8x64xbf16>
    %c0_1 = arith.constant 0 : index
    %c0_2 = arith.constant 0 : index
    %1 = vector.load %arg3[%c0_1, %c0_2] : memref<64x32xbf16, #tpu.memory_space<vmem>>, vector<64x32xbf16>
    %cst = arith.constant dense<0.000000e+00> : vector<8x32xf32>
    %2 = tpu.matmul %0, %1, %cst {dimension_numbers = #tpu.dot_dimension_numbers<[1], [0], [0], [1], [0, 0, 1, 1], [], []>} : vector<8x64xbf16>, vector<64x32xbf16>, vector<8x32xf32> -> vector<8x32xf32>
    %c0_3 = arith.constant 0 : index
    %c0_4 = arith.constant 0 : index
    %3 = vector.load %arg4[%c0_3, %c0_4] : memref<1x32xf32, #tpu.memory_space<vmem>>, vector<1x32xf32>
    %4 = vector.broadcast %3 : vector<1x32xf32> to vector<8x32xf32>
    %5 = arith.addf %2, %4 : vector<8x32xf32>
    %cst_5 = arith.constant 0.000000e+00 : f32
    %6 = vector.broadcast %cst_5 : f32 to vector<8x32xf32>
    %7 = arith.maximumf %5, %6 : vector<8x32xf32>
    %8 = arith.truncf %7 : vector<8x32xf32> to vector<8x32xbf16>
    %c0_6 = arith.constant 0 : index
    %c0_7 = arith.constant 0 : index
    %9 = vector.load %arg5[%c0_6, %c0_7] : memref<32x16xbf16, #tpu.memory_space<vmem>>, vector<32x16xbf16>
    %cst_8 = arith.constant dense<0.000000e+00> : vector<8x16xf32>
    %10 = tpu.matmul %8, %9, %cst_8 {dimension_numbers = #tpu.dot_dimension_numbers<[1], [0], [0], [1], [0, 0, 1, 1], [], []>} : vector<8x32xbf16>, vector<32x16xbf16>, vector<8x16xf32> -> vector<8x16xf32>
    %c0_9 = arith.constant 0 : index
    %c0_10 = arith.constant 0 : index
    %11 = vector.load %arg6[%c0_9, %c0_10] : memref<1x16xf32, #tpu.memory_space<vmem>>, vector<1x16xf32>
    %12 = vector.broadcast %11 : vector<1x16xf32> to vector<8x16xf32>
    %13 = arith.addf %10, %12 : vector<8x16xf32>
    %cst_11 = arith.constant 0.000000e+00 : f32
    %14 = vector.broadcast %cst_11 : f32 to vector<8x16xf32>
    %15 = arith.maximumf %13, %14 : vector<8x16xf32>
    %16 = arith.truncf %15 : vector<8x16xf32> to vector<8x16xbf16>
    %c0_12 = arith.constant 0 : index
    %c0_13 = arith.constant 0 : index
    %17 = vector.load %arg7[%c0_12, %c0_13] : memref<16x4xbf16, #tpu.memory_space<vmem>>, vector<16x4xbf16>
    %cst_14 = arith.constant dense<0.000000e+00> : vector<8x4xf32>
    %18 = tpu.matmul %16, %17, %cst_14 {dimension_numbers = #tpu.dot_dimension_numbers<[1], [0], [0], [1], [0, 0, 1, 1], [], []>} : vector<8x16xbf16>, vector<16x4xbf16>, vector<8x4xf32> -> vector<8x4xf32>
    %c0_15 = arith.constant 0 : index
    %c0_16 = arith.constant 0 : index
    %19 = vector.load %arg9[%c0_15, %c0_16] : memref<1x4xf32, #tpu.memory_space<vmem>>, vector<1x4xf32>
    %20 = vector.broadcast %19 : vector<1x4xf32> to vector<8x4xf32>
    %21 = arith.addf %18, %20 : vector<8x4xf32>
    %c0_17 = arith.constant 0 : index
    %c0_18 = arith.constant 0 : index
    %22 = vector.load %arg2[%c0_17, %c0_18] : memref<8x1xf32, #tpu.memory_space<vmem>>, vector<8x1xf32>
    %c0_19 = arith.constant 0 : index
    %c0_20 = arith.constant 0 : index
    %23 = vector.load %arg8[%c0_19, %c0_20] : memref<1x4xf32, #tpu.memory_space<vmem>>, vector<1x4xf32>
    %24 = vector.broadcast %22 : vector<8x1xf32> to vector<8x4xf32>
    %25 = vector.broadcast %23 : vector<1x4xf32> to vector<8x4xf32>
    %26 = arith.mulf %24, %25 : vector<8x4xf32>
    %27 = arith.addf %21, %26 : vector<8x4xf32>
    %c0_21 = arith.constant 0 : index
    %c0_22 = arith.constant 0 : index
    %28 = vector.load %arg10[%c0_21, %c0_22] : memref<8x4xf32, #tpu.memory_space<vmem>>, vector<8x4xf32>
    tpu.vector_store %arg10[%c0_21, %c0_22], %27 {strides = array<i32>} : memref<8x4xf32, #tpu.memory_space<vmem>>, vector<8x4xf32>,
    return
  }
  func.func @transform_0(%arg0: i32) -> (i32, i32) {
    %c0_i32 = arith.constant 0 : i32
    %c0_i32_0 = arith.constant 0 : i32
    return %arg0, %c0_i32 : i32, i32
  }
  func.func @transform_1(%arg0: i32) -> (i32, i32) {
    %c0_i32 = arith.constant 0 : i32
    %c0_i32_0 = arith.constant 0 : i32
    return %arg0, %c0_i32 : i32, i32
  }
  func.func @transform_2(%arg0: i32) -> (i32, i32) {
    %c0_i32 = arith.constant 0 : i32
    %c0_i32_0 = arith.constant 0 : i32
    %c0_i32_1 = arith.constant 0 : i32
    return %c0_i32, %c0_i32_0 : i32, i32
  }
  func.func @transform_3(%arg0: i32) -> (i32, i32) {
    %c0_i32 = arith.constant 0 : i32
    %c0_i32_0 = arith.constant 0 : i32
    %c0_i32_1 = arith.constant 0 : i32
    return %c0_i32, %c0_i32_0 : i32, i32
  }
  func.func @transform_4(%arg0: i32) -> (i32, i32) {
    %c0_i32 = arith.constant 0 : i32
    %c0_i32_0 = arith.constant 0 : i32
    %c0_i32_1 = arith.constant 0 : i32
    return %c0_i32, %c0_i32_0 : i32, i32
  }
  func.func @transform_5(%arg0: i32) -> (i32, i32) {
    %c0_i32 = arith.constant 0 : i32
    %c0_i32_0 = arith.constant 0 : i32
    %c0_i32_1 = arith.constant 0 : i32
    return %c0_i32, %c0_i32_0 : i32, i32
  }
  func.func @transform_6(%arg0: i32) -> (i32, i32) {
    %c0_i32 = arith.constant 0 : i32
    %c0_i32_0 = arith.constant 0 : i32
    %c0_i32_1 = arith.constant 0 : i32
    return %c0_i32, %c0_i32_0 : i32, i32
  }
  func.func @transform_7(%arg0: i32) -> (i32, i32) {
    %c0_i32 = arith.constant 0 : i32
    %c0_i32_0 = arith.constant 0 : i32
    %c0_i32_1 = arith.constant 0 : i32
    return %c0_i32, %c0_i32_0 : i32, i32
  }
  func.func @transform_8(%arg0: i32) -> (i32, i32) {
    %c0_i32 = arith.constant 0 : i32
    %c0_i32_0 = arith.constant 0 : i32
    %c0_i32_1 = arith.constant 0 : i32
    return %c0_i32, %c0_i32_0 : i32, i32
  }
  func.func @transform_9(%arg0: i32) -> (i32, i32) {
    %c0_i32 = arith.constant 0 : i32
    %c0_i32_0 = arith.constant 0 : i32
    return %arg0, %c0_i32 : i32, i32
  }
}

</mosaic_0001>

<bundles_post_ra>
// kernel: mlp_forward.1
= control target key start
LH: loop header
LB: loop body
LE: loop exit
PB: predicated region body
PF: predicated region fallthrough
CT: control target
= control target key end

     0   :  { %s782_s30 = smov 0   ;;  %s842_s0 = inlined_call_operand.vmem [shape: bf16[16,64], index: 0, kind: input, shape index: {}]   ;;  %s843_s1 = inlined_call_operand.vmem [shape: f32[16,1], index: 1, kind: input, shape index: {}]   ;;  %s844_s2 = inlined_call_operand.vmem [shape: bf16[64,32], index: 2, kind: input, shape index: {}]   ;;  %s845_s3 = inlined_call_operand.vmem [shape: f32[1,32], index: 3, kind: input, shape index: {}]   ;;  %s846_s4 = inlined_call_operand.vmem [shape: bf16[32,16], index: 4, kind: input, shape index: {}]   ;;  %s847_s5 = inlined_call_operand.vmem [shape: f32[1,16], index: 5, kind: input, shape index: {}]   ;;  %s848_s6 = inlined_call_operand.vmem [shape: bf16[16,4], index: 6, kind: input, shape index: {}]   ;;  %s849_s7 = inlined_call_operand.vmem [shape: f32[1,4], index: 7, kind: input, shape index: {}]   ;;  %s850_s8 = inlined_call_operand.vmem [shape: f32[1,4], index: 8, kind: input, shape index: {}]   ;;  %s851_s9 = inlined_call_operand.vmem [shape: f32[16,4], index: 9, kind: output, shape index: {}]  }
   0x1 LB: > { %s642_s10 = sadd.s32 4294967295, %s727_s30   ;;  %p646_p0 = scmp.ge.s32.totalorder %s727_s30, 1  ;;  %s727_s30 = sphi %s782_s30, %s19_s30  }
   0x2   : > { %p295_p1 = scmp.lt.s32.totalorder %s727_s30, 3 }
   0x4   : > { %p296_p2 = pnand %p646_p0, %p295_p1 }
   0x5   : > { %v714_v0 = vld [vmem:[%s844_s2] sm:$0xff] (!%p296_p2)   ;;  %v729_v1 = vmov (!%p296_p2), 0.0   ;;  %v715_v2 = vld [vmem:[%s844_s2 + $0x8] sm:$0xff] (!%p296_p2)   ;;  %vm730_vm0 = vmmov (!%p296_p2), 0   ;;  %p333_p3 = scmp.lt.s32.totalorder (!%p296_p2), %s642_s10, 1  ;;  %v716_v3 = vld [vmem:[%s844_s2 + $0x10] sm:$0xff] (!%p296_p2)  }
   0x6   : > { %299 = sbr.rel (%p296_p2) target bundleno = 675 (0x2a3), region = 56  ;;  %676 = vmatprep.subr.bf16.mxu0 (!%p296_p2), %v729_v1  ;;  %688 = vmatprep.subr.bf16.mxu1 (!%p296_p2), %v729_v1  ;;  %v717_v4 = vld [vmem:[%s844_s2 + $0x18] sm:$0xff] (!%p296_p2)   ;;  %vm386_vm1 = vcmask (!%p296_p2), 523264   ;;  %v718_v6 = vld [vmem:[%s846_s4] sm:$0xff] (!%p296_p2)   ;;  %v719_v7 = vld [vmem:[%s846_s4 + $0x8] sm:$0xff] (!%p296_p2)   ;;  %vm455_vm2 = vcmask (!%p296_p2), 261120  }
   0x7   : > { %677 = vmatpush3.bf16.msra.mxu0 (!%p296_p2), %v714_v0  ;;  %684 = vmatprep.mubr.msk.bf16.mxu0 (!%p296_p2), %vm730_vm0, %v729_v1  ;;  %v650_v8 = vld [vmem:[%s845_s3] ss:$0 sm:$0xff] (!%p296_p2)  ;;  %v731_v17 = vmov (!%p296_p2), 0   ;;  %vm516_vm3 = vcmask (!%p296_p2), 130048   ;;  %vm575_vm4 = vcmask (!%p296_p2), 31744  }
   0x8   : > { %678 = vmatprep.subr.bf16.mxu0 (!%p296_p2), %v729_v1  ;;  %692 = vmatprep.mubr.msk.bf16.mxu1 (!%p296_p2), %vm730_vm0, %v729_v1  ;;  %v720_v15 = vld [vmem:[%s848_s6] sm:$0xff] (!%p296_p2)  }
   0x9   : > { %689 = vmatpush3.bf16.msra.mxu1 (!%p296_p2), %v718_v6  ;;  %713 = vset.pattern.permute.xlu0 (!%p296_p2), %v731_v17  ;;  %v656_v19 = vld [vmem:[%s847_s5] ss:$0 sm:$0xff] (!%p296_p2) }
   0xa   : > { %690 = vmatprep.subr.bf16.mxu1 (!%p296_p2), %v729_v1  ;;  %v663_v27 = vld [vmem:[%s849_s7] ss:$0 sm:$0xff] (!%p296_p2) }
   0xb   : > { %679 = vmatpush3.bf16.msra.mxu0 (!%p296_p2), %v715_v2  ;;  %v660_v29 = vld [vmem:[%s850_s8] ss:$0 sm:$0xff] (!%p296_p2) }
   0xc   : > { %680 = vmatprep.subr.bf16.mxu0 (!%p296_p2), %v729_v1 }
   0xd   : > { %s853_s10 = smov (!%p333_p3, %s642_s10), 1  ;;  %691 = vmatpush3.bf16.msra.mxu1 %v719_v7 }
   0xe   : > { %s647_s17 = sshll.u32 %s853_s10, 2  ;;  %696 = vmatprep.subr.bf16.mxu1 %v729_v1  ;;  %s648_s12 = sshll.u32 %s853_s10, 3 }
   0xf   : > { %681 = vmatpush3.bf16.msra.mxu0 %v716_v3  ;;  %s336_s22 = scalar_lea.vmem %s842_s0, %s647_s17  ;;  %s340_s15 = scalar_lea.vmem %s843_s1, %s648_s12 }
  0x10   : > { %682 = vmatprep.subr.bf16.mxu0 %v729_v1  ;;  %v346_v5 = vld [vmem:[%s336_s22] sm:$0xf]  ;;  %s344_s23 = scalar_lea.vmem %s851_s9, %s648_s12 }
  0x11   : > { %v560_v18 = vld [vmem:[%s340_s15] sm:$0xff] }
  0x12   : > { %564 = vperm.xlu0 %713, %v560_v18  }
  0x13   : > { %683 = vmatpush3.bf16.msra.mxu0 %v717_v4 }
  0x16   : > { %685 = vmatmul.mubr.msk.bf16.vlgmr.msra.gmra.mrb[0].mxu0 %vm386_vm1, %v346_v5 }
  0x91   : > { %v565_v28 = vpop.permute.xlu0 %564 }
  0x92   : > { %v573_v30 = vmul.f32 %v663_v27, %v565_v28 }
  0xe9   : > { %v424_v9 = vpop.f32.mrb[0].mxu0 }
  0xea   : > { %v425_v10 = vadd.f32 %v650_v8, %v424_v9  ;;  %v686_v11 = vpop.f32.mrb[1].mxu0 }
  0xeb   : > { %v427_v12 = vpop.f32.mrb[2].mxu0 }
  0xec   : > { %v430_v13 = vmax.f32 %v425_v10, 0.0  ;;  %v687_v14 = vpop.f32.mrb[3].mxu0 }
  0xee   : > { %v431_v16 = vpack.c.bf16 %v430_v13, %v430_v13 }
  0xf0   : > { %693 = vmatmul.mubr.msk.bf16.vlgmr.msra.gmra.mrb[0].mxu1 %vm455_vm2, %v431_v16 }
  0xf1   : > { %697 = vmatpush3.bf16.msra.mxu1 %v720_v15  ;;  %698 = vmatprep.mubr.msk.bf16.mxu1 %vm730_vm0, %v729_v1 }
 0x1c3   : > { %v493_v20 = vpop.f32.mrb[0].mxu1 }
 0x1c4   : > { %v494_v21 = vadd.f32 %v656_v19, %v493_v20  ;;  %v694_v22 = vpop.f32.mrb[1].mxu1 }
 0x1c5   : > { %v496_v23 = vpop.f32.mrb[2].mxu1 }
 0x1c6   : > { %v499_v24 = vmax.f32 %v494_v21, 0.0  ;;  %v695_v25 = vpop.f32.mrb[3].mxu1 }
 0x1c8   : > { %v500_v26 = vpack.c.bf16 %v499_v24, %v499_v24 }
 0x1ca   : > { %699 = vmatmul.mubr.msk.bf16.vlgmr.msra.gmra.mrb[4].mxu1 %vm516_vm3, %v500_v26 }
 0x29d   : > { %v554_v31 = vpop.f32.mrb[4].mxu1 }
 0x29e   : > { %v555_v32 = vadd.f32 %v660_v29, %v554_v31  ;;  %v700_v33 = vpop.f32.mrb[5].mxu1 }
 0x29f   : > { %v557_v34 = vpop.f32.mrb[6].mxu1 }
 0x2a0   : > { %v574_v35 = vadd.f32 %v573_v30, %v555_v32  ;;  %v701_v36 = vpop.f32.mrb[7].mxu1 }
 0x2a2   : > { %576 = vst.msk [vmem:[%s344_s23] sm:$0xff] %vm575_vm4, %v574_v35 }
 0x2a3 PF: > { %s19_s30 = sadd.s32 1, %s727_s30  }
 0x2a4   : > { %p16_p4 = scmp.ge.s32.totalorder %s19_s30, 4  }
 0x2a6   :  { %18 = sbr.rel (!%p16_p4) target bundleno = 1 (0x1), region = 89 }

</bundles_post_ra>
